<compile_context>
chip_gen: v7x
topology: tpu7x:2x2x1
jax: 0.10.0
libtpu: 0.0.40
codegen_flags: <defaults>
</compile_context>

<pallas_src>
import functools

import jax
import jax.numpy as jnp
from jax import lax
from jax.experimental import pallas as pl
from jax.experimental.pallas import tpu as pltpu

_VMEM_LIMIT_BYTES = 48 * 1024 * 1024  # below v7x's 64 MiB physical VMEM


# ---------------------------------------------------------------------------
# Pallas kernels
# ---------------------------------------------------------------------------
def _conv_offset_kernel(xcol_ref, w_ref, b_ref, out_ref):
    """Plain kxk conv: (im2col rows, bf16) @ (weight, bf16) + bias, f32 accum."""
    acc = jnp.dot(xcol_ref[...], w_ref[...], preferred_element_type=jnp.float32)
    out_ref[...] = (acc + b_ref[...]).astype(out_ref.dtype)


def _dcn_matmul_kernel(v00_ref, v01_ref, v10_ref, v11_ref,
                       u00_ref, u01_ref, u10_ref, u11_ref,
                       bcast_ref, wmat_ref, out_ref, *, activate_out):
    """Modulated deformable conv hot path.

    v*    : bf16 (tm, K)        gathered corner values, K = cpg*kk*dg
                                (lane order: cpg slow, kernel tap, group fast)
    u*    : f32  (tm, kk*dg)    pre-folded bilinear_weight * sigmoid(mask),
                                one value per (kernel tap, group)
    bcast : f32  (kk*dg, K)     one-hot matrix replicating the compact u over
                                the cpg lane blocks (broadcast-by-matmul keeps
                                everything on well-supported MXU/VPU ops; the
                                extra flops are negligible in this mem-bound
                                kernel)
    wmat  : bf16 (K, Cout_pad)  conv_adaption weight, lane-padded to 128
    """
    bc = bcast_ref[...]

    def term(v_ref, u_ref):
        u_full = jnp.dot(u_ref[...], bc, preferred_element_type=jnp.float32)
        # combine in f32 (safe on v5e which has no bf16 VPU)
        return v_ref[...].astype(jnp.float32) * u_full

    modulated = (term(v00_ref, u00_ref) + term(v01_ref, u01_ref)
                 + term(v10_ref, u10_ref) + term(v11_ref, u11_ref))
    acc = jnp.dot(modulated.astype(jnp.bfloat16), wmat_ref[...],
                  preferred_element_type=jnp.float32)
    if activate_out:
        acc = jnp.maximum(acc, 0.0)
    out_ref[...] = acc.astype(out_ref.dtype)


# ---------------------------------------------------------------------------
# pallas_call wrappers
# ---------------------------------------------------------------------------
def _choose_tm(m, tm_max=512):
    """Largest row tile (<= tm_max) that still gives >= 2 grid steps."""
    for tm in (tm_max, 256):
        if pl.cdiv(m, tm) >= 2:
            return tm
    return 128


def conv_offset_mask_pallas(x_col, w_mat, bias, tm):
    mp, kdim = x_col.shape
    _, co = w_mat.shape                      # already padded to multiple of 128
    row_spec = pl.BlockSpec((tm, kdim), lambda i: (i, 0))
    return pl.pallas_call(
        _conv_offset_kernel,
        out_shape=jax.ShapeDtypeStruct((mp, co), jnp.float32),
        grid_spec=pltpu.PrefetchScalarGridSpec(
            num_scalar_prefetch=0,
            grid=(mp // tm,),
            in_specs=[row_spec,
                      pl.BlockSpec((kdim, co), lambda i: (0, 0)),
                      pl.BlockSpec((1, co), lambda i: (0, 0))],
            out_specs=pl.BlockSpec((tm, co), lambda i: (i, 0))),
        compiler_params=pltpu.CompilerParams(
            dimension_semantics=("parallel",),
            vmem_limit_bytes=_VMEM_LIMIT_BYTES),
    )(x_col, w_mat, bias)


def dcn_matmul_pallas(corners, us, bcast, w_mat, activate_out, tm):
    mp, kdim = corners[0].shape
    kkdg = us[0].shape[1]
    _, co = w_mat.shape                      # already padded to multiple of 128
    kernel = functools.partial(_dcn_matmul_kernel, activate_out=activate_out)
    v_spec = pl.BlockSpec((tm, kdim), lambda i: (i, 0))
    u_spec = pl.BlockSpec((tm, kkdg), lambda i: (i, 0))
    return pl.pallas_call(
        kernel,
        out_shape=jax.ShapeDtypeStruct((mp, co), jnp.float32),
        grid_spec=pltpu.PrefetchScalarGridSpec(
            num_scalar_prefetch=0,
            grid=(mp // tm,),
            in_specs=[v_spec] * 4 + [u_spec] * 4
                     + [pl.BlockSpec((kkdg, kdim), lambda i: (0, 0)),
                        pl.BlockSpec((kdim, co), lambda i: (0, 0))],
            out_specs=pl.BlockSpec((tm, co), lambda i: (i, 0))),
        compiler_params=pltpu.CompilerParams(
            dimension_semantics=("parallel",),
            vmem_limit_bytes=_VMEM_LIMIT_BYTES),
    )(*corners, *us, bcast, w_mat)


# ---------------------------------------------------------------------------
# FeatureAdaption forward
# ---------------------------------------------------------------------------
def feature_adaption_forward(x, params, *, kernel_size=3, deformable_groups=4,
                             activate_out=True):
    N, Cin, H, W = x.shape
    k = kernel_size
    kk = k * k
    dg = deformable_groups
    pad = (k - 1) // 2
    cpg = Cin // dg
    M = N * H * W
    Cout = params["w_adaption"].shape[0]

    tm = _choose_tm(M)
    Mp = pl.cdiv(M, tm) * tm

    def pad_rows(a):
        return a if Mp == M else jnp.pad(a, ((0, Mp - M), (0, 0)))

    def pad_cols(a, cp):
        return a if a.shape[-1] == cp else jnp.pad(a, ((0, 0), (0, cp - a.shape[-1])))

    x_bf = x.astype(jnp.bfloat16)

    # -------- conv_offset_mask: kxk conv via im2col + Pallas matmul --------
    # TODO(synk): fuse the 3x3 window extraction and the corner gather below
    # into the kernels (pl.ANY + manual DMA / scalar-prefetch indices) to avoid
    # materializing im2col tensors in HBM; kept as XLA glue here.
    x_padded = jnp.pad(x_bf, ((0, 0), (0, 0), (pad, pad), (pad, pad)))
    patches = jnp.stack([x_padded[:, :, i:i + H, j:j + W]
                         for i in range(k) for j in range(k)], axis=1)  # (N,kk,Cin,H,W)
    x_col = jnp.transpose(patches, (0, 3, 4, 1, 2)).reshape(M, kk * Cin)  # K=(kidx,ci)

    co_om = dg * kk * 3
    co_om_pad = pl.cdiv(co_om, 128) * 128
    w_om = jnp.transpose(params["w_offset_mask"], (2, 3, 1, 0)).reshape(kk * Cin, co_om)
    w_om = pad_cols(w_om.astype(jnp.bfloat16), co_om_pad)
    b_om = pad_cols(params["b_offset_mask"].reshape(1, co_om).astype(jnp.float32),
                    co_om_pad)

    om_rows = conv_offset_mask_pallas(pad_rows(x_col), w_om, b_om, tm)[:M, :co_om]
    om = om_rows.reshape(N, H, W, co_om)

    # torch.chunk(offset_mask, 3, dim=1); offset = cat(o1, o2); mask = sigmoid(mask)
    o1 = om[..., :dg * kk]
    o2 = om[..., dg * kk:2 * dg * kk]
    mlogit = om[..., 2 * dg * kk:].reshape(N, H, W, dg, kk)
    offset = jnp.concatenate([o1, o2], axis=-1).reshape(N, H, W, dg, kk, 2)
    off_y = offset[..., 0]                                    # (N,H,W,dg,kk)
    off_x = offset[..., 1]
    mask = jax.nn.sigmoid(mlogit)                             # (N,H,W,dg,kk)

    # -------- bilinear sample positions & corner gather (JAX glue) --------
    hh = jnp.arange(H, dtype=jnp.float32).reshape(1, H, 1, 1, 1)
    ww = jnp.arange(W, dtype=jnp.float32).reshape(1, 1, W, 1, 1)
    ki = (jnp.arange(kk) // k).astype(jnp.float32).reshape(1, 1, 1, 1, kk)
    kj = (jnp.arange(kk) % k).astype(jnp.float32).reshape(1, 1, 1, 1, kk)
    p_y = hh - pad + ki + off_y                               # (N,H,W,dg,kk)
    p_x = ww - pad + kj + off_x

    y0 = jnp.floor(p_y)
    x0 = jnp.floor(p_x)
    y1 = y0 + 1.0
    x1 = x0 + 1.0
    ly = p_y - y0
    lx = p_x - x0
    hy = 1.0 - ly
    hx = 1.0 - lx

    x_grp = x_bf.reshape(N, dg, cpg, H * W)

    def corner(yc, xc, wy, wx):
        valid = (yc >= 0) & (yc <= H - 1) & (xc >= 0) & (xc <= W - 1)
        # pre-fold bilinear weight * sigmoid(mask); zero for out-of-bounds corners
        u = jnp.where(valid, wy * wx, 0.0) * mask             # (N,H,W,dg,kk)
        yi = jnp.clip(yc, 0, H - 1).astype(jnp.int32)
        xi = jnp.clip(xc, 0, W - 1).astype(jnp.int32)
        idx = yi * W + xi                                     # (N,H,W,dg,kk)
        idx = jnp.transpose(idx, (0, 3, 1, 2, 4))             # (N,dg,H,W,kk)
        idx = jnp.broadcast_to(idx.reshape(N, dg, 1, H * W * kk),
                               (N, dg, cpg, H * W * kk))
        v = jnp.take_along_axis(x_grp, idx, axis=3).reshape(N, dg, cpg, H, W, kk)
        # rows: (M, K) with lane order (cpg slow, kidx, dg fast)  [bf16]
        v = jnp.transpose(v, (0, 3, 4, 2, 5, 1)).reshape(M, cpg * kk * dg)
        # compact folded weights: (M, kk*dg), lane order (kidx, dg)  [f32]
        u = jnp.transpose(u, (0, 1, 2, 4, 3)).reshape(M, kk * dg)
        return v, u.astype(jnp.float32)

    c00 = corner(y0, x0, hy, hx)
    c01 = corner(y0, x1, hy, lx)
    c10 = corner(y1, x0, ly, hx)
    c11 = corner(y1, x1, ly, lx)
    corners = [pad_rows(c[0]) for c in (c00, c01, c10, c11)]
    us = [pad_rows(c[1]) for c in (c00, c01, c10, c11)]

    # one-hot broadcast matrix: expands compact (kk*dg) lanes over the cpg blocks
    bcast = jnp.tile(jnp.eye(kk * dg, dtype=jnp.float32), (1, cpg))   # (kk*dg, K)

    # conv_adaption weight (Cout, Cin=dg*cpg, kh, kw) -> (K, Cout_pad), bf16,
    # row order (cpg, kidx, dg) matching the corner lane order.
    cout_pad = pl.cdiv(Cout, 128) * 128
    w_ad = params["w_adaption"].reshape(Cout, dg, cpg, kk)
    w_ad = jnp.transpose(w_ad, (2, 3, 1, 0)).reshape(cpg * kk * dg, Cout)
    w_ad = pad_cols(w_ad.astype(jnp.bfloat16), cout_pad)

    out_rows = dcn_matmul_pallas(corners, us, bcast, w_ad, activate_out, tm)
    out = out_rows[:M, :Cout].reshape(N, H, W, Cout)
    return jnp.transpose(out, (0, 3, 1, 2))                    # NCHW


# ---------------------------------------------------------------------------
if __name__ == "__main__":
    key = jax.random.PRNGKey(0)
    kx, kw = jax.random.split(key)

    N, Cin, H, W = 2, 16, 16, 16
    Cout, k, dg = 16, 3, 4

    x = jax.random.normal(kx, (N, Cin, H, W), dtype=jnp.float32)

    params = {
        # init_offset(): conv_offset_mask weight & bias are zero-initialized
        "w_offset_mask": jnp.zeros((dg * k * k * 3, Cin, k, k), jnp.float32),
        "b_offset_mask": jnp.zeros((dg * k * k * 3,), jnp.float32),
        # ModulatedDeformConv weight (bias=False), deterministic synthetic init
        "w_adaption": 0.05 * jax.random.normal(kw, (Cout, Cin, k, k), jnp.float32),
    }

    out = feature_adaption_forward(x, params, kernel_size=k,
                                   deformable_groups=dg, activate_out=True)
    out = jax.block_until_ready(out)
    assert out.shape == (N, Cout, H, W) and out.dtype == jnp.float32

    # Sanity check: with the module's zero-init offset conv, offsets == 0 and
    # mask == sigmoid(0) == 0.5, so the DCN collapses to relu(0.5*conv3x3(x,W)).
    # The kernels store operands in bf16 (f32 accumulate), so compare against a
    # reference computed on bf16-rounded inputs.
    x_q = x.astype(jnp.bfloat16).astype(jnp.float32)
    w_q = params["w_adaption"].astype(jnp.bfloat16).astype(jnp.float32)
    ref = lax.conv_general_dilated(
        x_q, w_q, window_strides=(1, 1), padding="SAME",
        dimension_numbers=("NCHW", "OIHW", "NCHW"))
    ref = jnp.maximum(0.5 * ref, 0.0)
    assert jnp.allclose(out, ref, atol=1e-3, rtol=1e-3), \
        float(jnp.max(jnp.abs(out - ref)))

    print("KERNEL_OK")
</pallas_src>

<mosaic_0001>
module attributes {stable_mosaic.version = 11 : i64} {
  func.func @_conv_offset_kernel(%arg0: i32, %arg1: memref<256x144xbf16, #tpu.memory_space<vmem>>, %arg2: memref<144x128xbf16, #tpu.memory_space<vmem>>, %arg3: memref<1x128xf32, #tpu.memory_space<vmem>>, %arg4: memref<256x128xf32, #tpu.memory_space<vmem>>) attributes {dimension_semantics = [#tpu.dimension_semantics<parallel>], iteration_bounds = array<i64: 2>, scalar_prefetch = 0 : i64, scratch_operands = 0 : i64, tpu.core_type = #tpu.core_type<tc>, window_params = [{transform_indices = @transform_0, window_bounds = array<i64: 256, 144>}, {pipeline_mode = #tpu.pipeline_mode<synchronous>, transform_indices = @transform_1, window_bounds = array<i64: 144, 128>}, {pipeline_mode = #tpu.pipeline_mode<synchronous>, transform_indices = @transform_2, window_bounds = array<i64: 1, 128>}, {transform_indices = @transform_3, window_bounds = array<i64: 256, 128>}]} {
    %c0 = arith.constant 0 : index
    %c0_0 = arith.constant 0 : index
    %0 = vector.load %arg1[%c0, %c0_0] : memref<256x144xbf16, #tpu.memory_space<vmem>>, vector<256x144xbf16>
    %c0_1 = arith.constant 0 : index
    %c0_2 = arith.constant 0 : index
    %1 = vector.load %arg2[%c0_1, %c0_2] : memref<144x128xbf16, #tpu.memory_space<vmem>>, vector<144x128xbf16>
    %cst = arith.constant dense<0.000000e+00> : vector<256x128xf32>
    %2 = tpu.matmul %0, %1, %cst {dimension_numbers = #tpu.dot_dimension_numbers<[1], [0], [0], [1], [0, 0, 1, 1], [], []>} : vector<256x144xbf16>, vector<144x128xbf16>, vector<256x128xf32> -> vector<256x128xf32>
    %c0_3 = arith.constant 0 : index
    %c0_4 = arith.constant 0 : index
    %3 = vector.load %arg3[%c0_3, %c0_4] : memref<1x128xf32, #tpu.memory_space<vmem>>, vector<1x128xf32>
    %4 = vector.broadcast %3 : vector<1x128xf32> to vector<256x128xf32>
    %5 = arith.addf %2, %4 : vector<256x128xf32>
    %c0_5 = arith.constant 0 : index
    %c0_6 = arith.constant 0 : index
    %6 = vector.load %arg4[%c0_5, %c0_6] : memref<256x128xf32, #tpu.memory_space<vmem>>, vector<256x128xf32>
    tpu.vector_store %arg4[%c0_5, %c0_6], %5 {strides = array<i32>} : memref<256x128xf32, #tpu.memory_space<vmem>>, vector<256x128xf32>,
    return
  }
  func.func @transform_0(%arg0: i32) -> (i32, i32) {
    %c0_i32 = arith.constant 0 : i32
    %c0_i32_0 = arith.constant 0 : i32
    return %arg0, %c0_i32 : i32, i32
  }
  func.func @transform_1(%arg0: i32) -> (i32, i32) {
    %c0_i32 = arith.constant 0 : i32
    %c0_i32_0 = arith.constant 0 : i32
    %c0_i32_1 = arith.constant 0 : i32
    return %c0_i32, %c0_i32_0 : i32, i32
  }
  func.func @transform_2(%arg0: i32) -> (i32, i32) {
    %c0_i32 = arith.constant 0 : i32
    %c0_i32_0 = arith.constant 0 : i32
    %c0_i32_1 = arith.constant 0 : i32
    return %c0_i32, %c0_i32_0 : i32, i32
  }
  func.func @transform_3(%arg0: i32) -> (i32, i32) {
    %c0_i32 = arith.constant 0 : i32
    %c0_i32_0 = arith.constant 0 : i32
    return %arg0, %c0_i32 : i32, i32
  }
}

</mosaic_0001>

<bundles_post_ra>
// kernel: tpu_custom_call.1
= control target key start
LH: loop header
LB: loop body
LE: loop exit
PB: predicated region body
PF: predicated region fallthrough
CT: control target
= control target key end

     0   :  { %8 = vsyncpa [#allocation3], 0  ;;  %s1282_s0 = inlined_call_operand.vmem [shape: bf16[512,144], index: 0, kind: input, shape index: {}]   ;;  %s1283_s1 = inlined_call_operand.vmem [shape: bf16[144,128], index: 1, kind: input, shape index: {}]   ;;  %s1284_s2 = inlined_call_operand.vmem [shape: f32[1,128], index: 2, kind: input, shape index: {}]   ;;  %s1285_s3 = inlined_call_operand.hbm [shape: f32[512,128], index: 3, kind: output, shape index: {}]  }
   0x1   :  { %10 = vsyncpa [#allocation3 + $0x1], 0  ;;  %s1027_s12 = smov 0   ;;  %s1029_s13 = smov 0  }
   0x2   :  { %s1031_s14 = smov 0   ;;  %s1033_s15 = smov 0  }
   0x3 LB: > { %s1048_s16 = sadd.s32 4294967295, %s1001_s15   ;;  %s749_s17 = sadd.s32 4294967294, %s1001_s15   ;;  %s1001_s15 = sphi %s1033_s15, %s1291_s15   ;;  %s997_s14 = sphi %s1031_s14, %s1290_s14   ;;  %s993_s13 = sphi %s1029_s13, %s1289_s13   ;;  %s989_s12 = sphi %s1027_s12, %s1288_s12  }
   0x4   : > { %s1052_s18 = sadd.s32 1, %s1001_s15   ;;  %s91_s19 = sadd.s32 1, %s997_s14 }
   0x5   : > { %s88_s20 = ssub.s32 %s1001_s15, %s1052_s18  ;;  %p101_p0 = scmp.ne.s32.totalorder %s997_s14, %s993_s13 }
   0x6   : > { %p89_p1 = scmp.eq.s32.totalorder %s88_s20, 0  ;;  %p102_p2 = scmp.eq.s32.totalorder %s1048_s16, 1 }
   0x7   : > { %p107_p3 = scmp.ne.s32.totalorder %s993_s13, %s989_s12  ;;  %p108_p4 = scmp.eq.s32.totalorder %s749_s17, 1 }
   0x8   : > { %s1063_s21 = scalar_select %p89_p1, %s997_s14, %s91_s19  }
   0x9   : > { %p1065_p5 = por %p102_p2, %p101_p0  ;;  %p1069_p6 = por %p108_p4, %p107_p3 }
   0xa   : > { %p752_p7 = scmp.ge.s32.totalorder %s1001_s15, 1  ;;  %p142_p8 = scmp.lt.s32.totalorder %s1001_s15, 3 }
   0xc   : > { %p143_p9 = pnand %p752_p7, %p142_p8 }
   0xd   : > { %v882_v0 = vld [vmem:[%s1283_s1] sm:$0xff] (!%p143_p9)   ;;  %v1003_v1 = vmov (!%p143_p9), 0   ;;  %s754_s26 = sshll.u32 (!%p143_p9), %s1048_s16, 5  ;;  %v883_v2 = vld [vmem:[%s1283_s1 + $0x8] sm:$0xff] (!%p143_p9)   ;;  %v884_v3 = vld [vmem:[%s1283_s1 + $0x10] sm:$0xff] (!%p143_p9)   ;;  %vm431_vm0 = vcmask (!%p143_p9), 130048  }
   0xe   : > { %146 = sbr.rel (%p143_p9) target bundleno = 337 (0x151), region = 32  ;;  %480 = vmatprep.subr.bf16.mxu0 (!%p143_p9), %v1003_v1  ;;  %822 = vmatprep.subr.bf16.mxu1 (!%p143_p9), %v1003_v1  ;;  %p168_p10 = scmp.lt.s32.totalorder (!%p143_p9), %s754_s26, 63  ;;  %v885_v4 = vld [vmem:[%s1283_s1 + $0x18] sm:$0xff] (!%p143_p9)   ;;  %v886_v7 = vld [vmem:[%s1283_s1 + $0x20] sm:$0xff] (!%p143_p9)   ;;  %v887_v8 = vld [vmem:[%s1283_s1 + $0x28] sm:$0xff] (!%p143_p9)  }
   0xf   : > { %481 = vmatpush1.bf16.msra.mxu0 (!%p143_p9), %v882_v0  ;;  %831 = vmatpush1.bf16.msra.mxu1 (!%p143_p9), %v882_v0  ;;  %v888_v9 = vld [vmem:[%s1283_s1 + $0x30] sm:$0xff] (!%p143_p9)   ;;  %v889_v10 = vld [vmem:[%s1283_s1 + $0x38] sm:$0xff] (!%p143_p9)   ;;  %v890_v11 = vld [vmem:[%s1283_s1 + $0x40] sm:$0xff] (!%p143_p9)   ;;  %s164_s29 = sand.u32 (!%p143_p9), 1, %s993_s13   ;;  %s1004_s19 = smov (!%p143_p9), [#allocation2]  }
  0x10   : > { %482 = vmatprep.subr.bf16.mxu0 (!%p143_p9), %v1003_v1  ;;  %823 = vmatprep.subr.bf16.mxu1 (!%p143_p9), %v1003_v1  ;;  %s753_s30 = sshll.u32 (!%p143_p9), %s164_s29, 8  ;;  %v1162_v42 = vld [vmem:[%s1284_s2] ss:$0 sm:$0xff] (!%p143_p9)  ;;  %s943_s20 = sshll.u32 (!%p143_p9), %s1004_s19, 4  ;;  %s944_s20 = int_to_ptr.vmem [resolvable:$false] %s943_s20 }
  0x11   : > { %s1166_s6 = scalar_lea.vmem (!%p143_p9), [#allocation2], %s753_s30  ;;  %s945_s24 = scalar_lea.vmem (!%p143_p9), %s944_s20, 8192 }
  0x12   : > { %s687_s8 = sshll.u32 (!%p143_p9), %s1166_s6, 4  ;;  %s1231_s8 = int_to_ptr.vmem [resolvable:$true] %s687_s8 }
  0x13   : > { %483 = vmatpush1.bf16.msra.mxu0 (!%p143_p9), %v883_v2  ;;  %832 = vmatpush1.bf16.msra.mxu1 (!%p143_p9), %v883_v2  ;;  %s939_s17 = scalar_lea.vmem (!%p143_p9), %s1231_s8, 4096  ;;  %p946_p0 = scmp.lt.s32.totalorder (!%p143_p9), %s1231_s8, %s944_s20 }
  0x14   : > { %484 = vmatprep.subr.bf16.mxu0 (!%p143_p9), %v1003_v1  ;;  %824 = vmatprep.subr.bf16.mxu1 (!%p143_p9), %v1003_v1  ;;  %p940_p11 = scmp.ne.s32.totalorder (!%p143_p9), %s1231_s8, %s939_s17  ;;  %p947_p1 = scmp.lt.s32.totalorder (!%p143_p9), %s945_s24, %s939_s17 }
  0x15   : > { %s1293_s26 = smov (!%p168_p10, %s754_s26), 63 }
  0x16   : > { %s820_s4 = sshll.u32 %s1293_s26, 3  ;;  %p941_p12 = pnand %p940_p11, %p1065_p5 }
  0x17   : > { %s1088_s7 = scalar_lea.vmem %s1282_s0, %s820_s4  ;;  %485 = vmatpush1.bf16.msra.mxu0 %v884_v3  ;;  %833 = vmatpush1.bf16.msra.mxu1 %v884_v3  ;;  %p948_p2 = por %p947_p1, %p946_p0 }
  0x18   : > { %v893_v5 = vld [vmem:[%s1088_s7 + $0x4] ss:$8 sps:$4 sm:$0xff]   ;;  %486 = vmatprep.subr.bf16.mxu0 %v1003_v1  ;;  %825 = vmatprep.subr.bf16.mxu1 %v1003_v1  ;;  %v891_v12 = vld [vmem:[%s1088_s7] ss:$8 sps:$4 sm:$0xff]   ;;  %v897_v14 = vld [vmem:[%s1088_s7 + $0x14] ss:$8 sps:$4 sm:$0xff]   ;;  %p942_p13 = pneg %p941_p12 }
  0x19   : > { %v896_v6 = vld [vmem:[%s1088_s7 + $0x84] ss:$8 sps:$4 sm:$0xff]   ;;  %799 = vmatprep.mubr.msk.bf16.mxu0 %vm431_vm0, %v893_v5  ;;  %v894_v13 = vld [vmem:[%s1088_s7 + $0x80] ss:$8 sps:$4 sm:$0xff]   ;;  %v899_v15 = vld [vmem:[%s1088_s7 + $0x94] ss:$8 sps:$4 sm:$0xff]  }
  0x1a   : > { %807 = vmatprep.mubr.msk.bf16.mxu1 %vm431_vm0, %v896_v6  ;;  %v901_v16 = vld [vmem:[%s1088_s7 + $0x10] ss:$8 sps:$4 sm:$0xff]   ;;  %v903_v18 = vld [vmem:[%s1088_s7 + $0x24] ss:$8 sps:$4 sm:$0xff]   ;;  %v907_v20 = vld [vmem:[%s1088_s7 + $0x20] ss:$8 sps:$4 sm:$0xff]   ;;  %p949_p3 = pnand %p948_p2, %p942_p13 }
  0x1b   : > { %487 = vmatpush1.bf16.msra.mxu0 %v885_v4  ;;  %834 = vmatpush1.bf16.msra.mxu1 %v885_v4  ;;  %v902_v17 = vld [vmem:[%s1088_s7 + $0x90] ss:$8 sps:$4 sm:$0xff]   ;;  %v905_v19 = vld [vmem:[%s1088_s7 + $0xa4] ss:$8 sps:$4 sm:$0xff]   ;;  %v908_v21 = vld [vmem:[%s1088_s7 + $0xa0] ss:$8 sps:$4 sm:$0xff]  }
  0x1c   : > { %488 = vmatprep.subr.bf16.mxu0 %v1003_v1  ;;  %826 = vmatprep.subr.bf16.mxu1 %v1003_v1  ;;  %v909_v22 = vld [vmem:[%s1088_s7 + $0x34] ss:$8 sps:$4 sm:$0xff]   ;;  %v913_v24 = vld [vmem:[%s1088_s7 + $0x30] ss:$8 sps:$4 sm:$0xff]   ;;  %v915_v26 = vld [vmem:[%s1088_s7 + $0x44] ss:$8 sps:$4 sm:$0xff]  }
  0x1d   : > { %v911_v23 = vld [vmem:[%s1088_s7 + $0xb4] ss:$8 sps:$4 sm:$0xff]   ;;  %v914_v25 = vld [vmem:[%s1088_s7 + $0xb0] ss:$8 sps:$4 sm:$0xff]   ;;  %v917_v27 = vld [vmem:[%s1088_s7 + $0xc4] ss:$8 sps:$4 sm:$0xff]  }
  0x1e   : > { %v919_v28 = vld [vmem:[%s1088_s7 + $0x40] ss:$8 sps:$4 sm:$0xff]   ;;  %v921_v30 = vld [vmem:[%s1088_s7 + $0x54] ss:$8 sps:$4 sm:$0xff]   ;;  %v925_v32 = vld [vmem:[%s1088_s7 + $0x50] ss:$8 sps:$4 sm:$0xff]  }
  0x1f   : > { %489 = vmatpush1.bf16.msra.mxu0 %v886_v7  ;;  %835 = vmatpush1.bf16.msra.mxu1 %v886_v7  ;;  %v920_v29 = vld [vmem:[%s1088_s7 + $0xc0] ss:$8 sps:$4 sm:$0xff]   ;;  %v923_v31 = vld [vmem:[%s1088_s7 + $0xd4] ss:$8 sps:$4 sm:$0xff]   ;;  %v926_v33 = vld [vmem:[%s1088_s7 + $0xd0] ss:$8 sps:$4 sm:$0xff]  }
  0x20   : > { %490 = vmatprep.subr.bf16.mxu0 %v1003_v1  ;;  %827 = vmatprep.subr.bf16.mxu1 %v1003_v1  ;;  %v927_v34 = vld [vmem:[%s1088_s7 + $0x64] ss:$8 sps:$4 sm:$0xff]   ;;  %v931_v36 = vld [vmem:[%s1088_s7 + $0x60] ss:$8 sps:$4 sm:$0xff]   ;;  %v933_v38 = vld [vmem:[%s1088_s7 + $0x74] ss:$8 sps:$4 sm:$0xff]  }
  0x21   : > { %v929_v35 = vld [vmem:[%s1088_s7 + $0xe4] ss:$8 sps:$4 sm:$0xff]   ;;  %v932_v37 = vld [vmem:[%s1088_s7 + $0xe0] ss:$8 sps:$4 sm:$0xff]   ;;  %v935_v39 = vld [vmem:[%s1088_s7 + $0xf4] ss:$8 sps:$4 sm:$0xff]  }
  0x22   : > { %v937_v40 = vld [vmem:[%s1088_s7 + $0x70] ss:$8 sps:$4 sm:$0xff]  }
  0x23   : > { %491 = vmatpush1.bf16.msra.mxu0 %v887_v8  ;;  %836 = vmatpush1.bf16.msra.mxu1 %v887_v8  ;;  %v938_v41 = vld [vmem:[%s1088_s7 + $0xf0] ss:$8 sps:$4 sm:$0xff]   ;;  %s821_s7 = sshll.u32 %s1048_s16, 12  ;;  %s1241_s16 = scalar_lea.sflag [#allocation3], %s164_s29 }
  0x24   : > { %492 = vmatprep.subr.bf16.mxu0 %v1003_v1  ;;  %828 = vmatprep.subr.bf16.mxu1 %v1003_v1  ;;  %s1229_s11 = scalar_lea.hbm %s1285_s3, %s821_s7 }
  0x27   : > { %493 = vmatpush1.bf16.msra.mxu0 %v888_v9  ;;  %837 = vmatpush1.bf16.msra.mxu1 %v888_v9 }
  0x28   : > { %494 = vmatprep.subr.bf16.mxu0 %v1003_v1  ;;  %829 = vmatprep.subr.bf16.mxu1 %v1003_v1 }
  0x2b   : > { %495 = vmatpush1.bf16.msra.mxu0 %v889_v10  ;;  %838 = vmatpush1.bf16.msra.mxu1 %v889_v10 }
  0x2c   : > { %496 = vmatprep.subr.bf16.mxu0 %v1003_v1  ;;  %830 = vmatprep.subr.bf16.mxu1 %v1003_v1 }
  0x2f   : > { %497 = vmatpush1.bf16.msra.mxu0 %v890_v11  ;;  %839 = vmatpush1.bf16.msra.mxu1 %v890_v11 }
  0x32   : > { %513 = vmatmul.mubr.bf16.vlgmr.msra.gmra.mrb[0].mxu0 %v891_v12  ;;  %577 = vmatmul.mubr.bf16.vlgmr.msra.gmra.mrb[0].mxu1 %v894_v13 }
  0x33   : > { %800 = vmatprep.mubr.msk.bf16.mxu0 %vm431_vm0, %v897_v14  ;;  %808 = vmatprep.mubr.msk.bf16.mxu1 %vm431_vm0, %v899_v15 }
  0x3a   : > { %521 = vmatmul.mubr.bf16.gmra.mrb[4].mxu0 %v901_v16  ;;  %585 = vmatmul.mubr.bf16.gmra.mrb[4].mxu1 %v902_v17 }
  0x3b   : > { %801 = vmatprep.mubr.msk.bf16.mxu0 %vm431_vm0, %v903_v18  ;;  %809 = vmatprep.mubr.msk.bf16.mxu1 %vm431_vm0, %v905_v19 }
  0x42   : > { %529 = vmatmul.mubr.bf16.gmra.mrb[8].mxu0 %v907_v20  ;;  %593 = vmatmul.mubr.bf16.gmra.mrb[8].mxu1 %v908_v21 }
  0x43   : > { %802 = vmatprep.mubr.msk.bf16.mxu0 %vm431_vm0, %v909_v22  ;;  %810 = vmatprep.mubr.msk.bf16.mxu1 %vm431_vm0, %v911_v23 }
  0x4a   : > { %537 = vmatmul.mubr.bf16.gmra.mrb[12].mxu0 %v913_v24  ;;  %601 = vmatmul.mubr.bf16.gmra.mrb[12].mxu1 %v914_v25 }
  0x4b   : > { %803 = vmatprep.mubr.msk.bf16.mxu0 %vm431_vm0, %v915_v26  ;;  %811 = vmatprep.mubr.msk.bf16.mxu1 %vm431_vm0, %v917_v27 }
  0x52   : > { %545 = vmatmul.mubr.bf16.gmra.mrb[16].mxu0 %v919_v28  ;;  %609 = vmatmul.mubr.bf16.gmra.mrb[16].mxu1 %v920_v29 }
  0x53   : > { %804 = vmatprep.mubr.msk.bf16.mxu0 %vm431_vm0, %v921_v30  ;;  %812 = vmatprep.mubr.msk.bf16.mxu1 %vm431_vm0, %v923_v31 }
  0x5a   : > { %553 = vmatmul.mubr.bf16.gmra.mrb[20].mxu0 %v925_v32  ;;  %617 = vmatmul.mubr.bf16.gmra.mrb[20].mxu1 %v926_v33 }
  0x5b   : > { %805 = vmatprep.mubr.msk.bf16.mxu0 %vm431_vm0, %v927_v34  ;;  %813 = vmatprep.mubr.msk.bf16.mxu1 %vm431_vm0, %v929_v35 }
  0x62   : > { %561 = vmatmul.mubr.bf16.gmra.mrb[24].mxu0 %v931_v36  ;;  %625 = vmatmul.mubr.bf16.gmra.mrb[24].mxu1 %v932_v37 }
  0x63   : > { %806 = vmatprep.mubr.msk.bf16.mxu0 %vm431_vm0, %v933_v38  ;;  %814 = vmatprep.mubr.msk.bf16.mxu1 %vm431_vm0, %v935_v39 }
  0x6a   : > { %569 = vmatmul.mubr.bf16.gmra.mrb[28].mxu0 %v937_v40  ;;  %633 = vmatmul.mubr.bf16.gmra.mrb[28].mxu1 %v938_v41 }
 0x105   : > { %v514_v43 = vpop.f32.mrb[0].mxu0  ;;  %v578_v44 = vpop.f32.mrb[0].mxu1 }
 0x106   : > { %v515_v45 = vadd.f32 %v1162_v42, %v514_v43  ;;  %v579_v46 = vadd.f32 %v1162_v42, %v578_v44  ;;  %v516_v47 = vpop.f32.mrb[1].mxu0  ;;  %v580_v48 = vpop.f32.mrb[1].mxu1 }
 0x107   : > { %v517_v49 = vpop.f32.mrb[2].mxu0  ;;  %v581_v50 = vpop.f32.mrb[2].mxu1 }
 0x108   : > { %641 = vst [vmem:[%s1166_s6] sm:$0xff] %v515_v45  ;;  %657 = vst [vmem:[%s1166_s6 + $0x80] sm:$0xff] %v579_v46  ;;  %v518_v51 = vadd.f32 %v1162_v42, %v517_v49  ;;  %v582_v52 = vadd.f32 %v1162_v42, %v581_v50  ;;  %v519_v53 = vpop.f32.mrb[3].mxu0  ;;  %v583_v54 = vpop.f32.mrb[3].mxu1 }
 0x10a   : > { %642 = vst [vmem:[%s1166_s6 + $0x8] sm:$0xff] %v518_v51  ;;  %658 = vst [vmem:[%s1166_s6 + $0x88] sm:$0xff] %v582_v52 }
 0x10d   : > { %v522_v55 = vpop.f32.mrb[4].mxu0  ;;  %v586_v56 = vpop.f32.mrb[4].mxu1 }
 0x10e   : > { %v523_v57 = vadd.f32 %v1162_v42, %v522_v55  ;;  %v587_v58 = vadd.f32 %v1162_v42, %v586_v56  ;;  %v524_v59 = vpop.f32.mrb[5].mxu0  ;;  %v588_v60 = vpop.f32.mrb[5].mxu1 }
 0x10f   : > { %v525_v61 = vpop.f32.mrb[6].mxu0  ;;  %v589_v62 = vpop.f32.mrb[6].mxu1 }
 0x110   : > { %643 = vst [vmem:[%s1166_s6 + $0x10] sm:$0xff] %v523_v57  ;;  %659 = vst [vmem:[%s1166_s6 + $0x90] sm:$0xff] %v587_v58  ;;  %v526_v63 = vadd.f32 %v1162_v42, %v525_v61  ;;  %v590_v0 = vadd.f32 %v1162_v42, %v589_v62  ;;  %v527_v1 = vpop.f32.mrb[7].mxu0  ;;  %v591_v2 = vpop.f32.mrb[7].mxu1 }
 0x112   : > { %644 = vst [vmem:[%s1166_s6 + $0x18] sm:$0xff] %v526_v63  ;;  %660 = vst [vmem:[%s1166_s6 + $0x98] sm:$0xff] %v590_v0 }
 0x115   : > { %v530_v3 = vpop.f32.mrb[8].mxu0  ;;  %v594_v4 = vpop.f32.mrb[8].mxu1 }
 0x116   : > { %v531_v5 = vadd.f32 %v1162_v42, %v530_v3  ;;  %v595_v6 = vadd.f32 %v1162_v42, %v594_v4  ;;  %v532_v7 = vpop.f32.mrb[9].mxu0  ;;  %v596_v8 = vpop.f32.mrb[9].mxu1 }
 0x117   : > { %v533_v9 = vpop.f32.mrb[10].mxu0  ;;  %v597_v10 = vpop.f32.mrb[10].mxu1 }
 0x118   : > { %645 = vst [vmem:[%s1166_s6 + $0x20] sm:$0xff] %v531_v5  ;;  %661 = vst [vmem:[%s1166_s6 + $0xa0] sm:$0xff] %v595_v6  ;;  %v534_v11 = vadd.f32 %v1162_v42, %v533_v9  ;;  %v598_v12 = vadd.f32 %v1162_v42, %v597_v10  ;;  %v535_v13 = vpop.f32.mrb[11].mxu0  ;;  %v599_v14 = vpop.f32.mrb[11].mxu1 }
 0x11a   : > { %646 = vst [vmem:[%s1166_s6 + $0x28] sm:$0xff] %v534_v11  ;;  %662 = vst [vmem:[%s1166_s6 + $0xa8] sm:$0xff] %v598_v12 }
 0x11d   : > { %v538_v15 = vpop.f32.mrb[12].mxu0  ;;  %v602_v16 = vpop.f32.mrb[12].mxu1 }
 0x11e   : > { %v539_v17 = vadd.f32 %v1162_v42, %v538_v15  ;;  %v603_v18 = vadd.f32 %v1162_v42, %v602_v16  ;;  %v540_v19 = vpop.f32.mrb[13].mxu0  ;;  %v604_v20 = vpop.f32.mrb[13].mxu1 }
 0x11f   : > { %v541_v21 = vpop.f32.mrb[14].mxu0  ;;  %v605_v22 = vpop.f32.mrb[14].mxu1 }
 0x120   : > { %647 = vst [vmem:[%s1166_s6 + $0x30] sm:$0xff] %v539_v17  ;;  %663 = vst [vmem:[%s1166_s6 + $0xb0] sm:$0xff] %v603_v18  ;;  %v542_v23 = vadd.f32 %v1162_v42, %v541_v21  ;;  %v606_v24 = vadd.f32 %v1162_v42, %v605_v22  ;;  %v543_v25 = vpop.f32.mrb[15].mxu0  ;;  %v607_v26 = vpop.f32.mrb[15].mxu1 }
 0x122   : > { %648 = vst [vmem:[%s1166_s6 + $0x38] sm:$0xff] %v542_v23  ;;  %664 = vst [vmem:[%s1166_s6 + $0xb8] sm:$0xff] %v606_v24 }
 0x125   : > { %v546_v27 = vpop.f32.mrb[16].mxu0  ;;  %v610_v28 = vpop.f32.mrb[16].mxu1 }
 0x126   : > { %v547_v29 = vadd.f32 %v1162_v42, %v546_v27  ;;  %v611_v30 = vadd.f32 %v1162_v42, %v610_v28  ;;  %v548_v31 = vpop.f32.mrb[17].mxu0  ;;  %v612_v32 = vpop.f32.mrb[17].mxu1 }
 0x127   : > { %v549_v33 = vpop.f32.mrb[18].mxu0  ;;  %v613_v34 = vpop.f32.mrb[18].mxu1 }
 0x128   : > { %649 = vst [vmem:[%s1166_s6 + $0x40] sm:$0xff] %v547_v29  ;;  %665 = vst [vmem:[%s1166_s6 + $0xc0] sm:$0xff] %v611_v30  ;;  %v550_v35 = vadd.f32 %v1162_v42, %v549_v33  ;;  %v614_v36 = vadd.f32 %v1162_v42, %v613_v34  ;;  %v551_v37 = vpop.f32.mrb[19].mxu0  ;;  %v615_v38 = vpop.f32.mrb[19].mxu1 }
 0x12a   : > { %650 = vst [vmem:[%s1166_s6 + $0x48] sm:$0xff] %v550_v35  ;;  %666 = vst [vmem:[%s1166_s6 + $0xc8] sm:$0xff] %v614_v36 }
 0x12d   : > { %v554_v39 = vpop.f32.mrb[20].mxu0  ;;  %v618_v40 = vpop.f32.mrb[20].mxu1 }
 0x12e   : > { %v555_v41 = vadd.f32 %v1162_v42, %v554_v39  ;;  %v619_v43 = vadd.f32 %v1162_v42, %v618_v40  ;;  %v556_v44 = vpop.f32.mrb[21].mxu0  ;;  %v620_v45 = vpop.f32.mrb[21].mxu1 }
 0x12f   : > { %v557_v46 = vpop.f32.mrb[22].mxu0  ;;  %v621_v47 = vpop.f32.mrb[22].mxu1 }
 0x130   : > { %651 = vst [vmem:[%s1166_s6 + $0x50] sm:$0xff] %v555_v41  ;;  %667 = vst [vmem:[%s1166_s6 + $0xd0] sm:$0xff] %v619_v43  ;;  %v558_v48 = vadd.f32 %v1162_v42, %v557_v46  ;;  %v622_v49 = vadd.f32 %v1162_v42, %v621_v47  ;;  %v559_v50 = vpop.f32.mrb[23].mxu0  ;;  %v623_v51 = vpop.f32.mrb[23].mxu1 }
 0x132   : > { %652 = vst [vmem:[%s1166_s6 + $0x58] sm:$0xff] %v558_v48  ;;  %668 = vst [vmem:[%s1166_s6 + $0xd8] sm:$0xff] %v622_v49 }
 0x135   : > { %v562_v52 = vpop.f32.mrb[24].mxu0  ;;  %v626_v53 = vpop.f32.mrb[24].mxu1 }
 0x136   : > { %v563_v54 = vadd.f32 %v1162_v42, %v562_v52  ;;  %v627_v55 = vadd.f32 %v1162_v42, %v626_v53  ;;  %v564_v56 = vpop.f32.mrb[25].mxu0  ;;  %v628_v57 = vpop.f32.mrb[25].mxu1 }
 0x137   : > { %v565_v58 = vpop.f32.mrb[26].mxu0  ;;  %v629_v59 = vpop.f32.mrb[26].mxu1 }
 0x138   : > { %653 = vst [vmem:[%s1166_s6 + $0x60] sm:$0xff] %v563_v54  ;;  %669 = vst [vmem:[%s1166_s6 + $0xe0] sm:$0xff] %v627_v55  ;;  %v566_v60 = vadd.f32 %v1162_v42, %v565_v58  ;;  %v630_v61 = vadd.f32 %v1162_v42, %v629_v59  ;;  %v567_v62 = vpop.f32.mrb[27].mxu0  ;;  %v631_v63 = vpop.f32.mrb[27].mxu1 }
 0x13a   : > { %654 = vst [vmem:[%s1166_s6 + $0x68] sm:$0xff] %v566_v60  ;;  %670 = vst [vmem:[%s1166_s6 + $0xe8] sm:$0xff] %v630_v61 }
 0x13d   : > { %v570_v0 = vpop.f32.mrb[28].mxu0  ;;  %v634_v1 = vpop.f32.mrb[28].mxu1 }
 0x13e   : > { %v571_v2 = vadd.f32 %v1162_v42, %v570_v0  ;;  %v635_v3 = vadd.f32 %v1162_v42, %v634_v1  ;;  %v572_v4 = vpop.f32.mrb[29].mxu0  ;;  %v636_v5 = vpop.f32.mrb[29].mxu1 }
 0x13f   : > { %v573_v6 = vpop.f32.mrb[30].mxu0  ;;  %v637_v7 = vpop.f32.mrb[30].mxu1 }
 0x140   : > { %655 = vst [vmem:[%s1166_s6 + $0x70] sm:$0xff] %v571_v2  ;;  %671 = vst [vmem:[%s1166_s6 + $0xf0] sm:$0xff] %v635_v3  ;;  %v574_v8 = vadd.f32 %v1162_v42, %v573_v6  ;;  %v638_v9 = vadd.f32 %v1162_v42, %v637_v7  ;;  %v575_v10 = vpop.f32.mrb[31].mxu0  ;;  %v639_v11 = vpop.f32.mrb[31].mxu1 }
 0x142   : > { %656 = vst [vmem:[%s1166_s6 + $0x78] sm:$0xff] %v574_v8  ;;  %672 = vst [vmem:[%s1166_s6 + $0xf8] sm:$0xff] %v638_v9 }
 0x143   : > { %952 = shalt.err (!%p949_p3)
}
 0x144   : > { %s953_s25 = scalar_lea.hbm %s1229_s11, 4096  ;;  %s957_s28 = scalar_lea.hbm %s1285_s3, 8192 }
 0x145   : > { %p954_p4 = scmp.ne.s32.totalorder %s1229_s11, %s953_s25  ;;  %p958_p9 = scmp.lt.u32.totalorder %s1229_s11, %s1285_s3 }
 0x146   : > { %p959_p10 = scmp.lt.u32.totalorder %s957_s28, %s953_s25  ;;  %p961_p12 = scmp.lt.u32.totalorder %s953_s25, %s1229_s11 }
 0x147   : > { %p955_p7 = pnand %p954_p4, %p1065_p5 }
 0x148   : > { %p960_p11 = por %p959_p10, %p958_p9 }
 0x149   : > { %p956_p8 = pneg %p955_p7 }
 0x14a   : > { %p962_p13 = por %p961_p12, %p960_p11 }
 0x14c   : > { %p963_p0 = pnand %p962_p13, %p956_p8 }
 0x14e   : > { %966 = shalt.err (!%p963_p0)
}
 0x14f   : > { %s1005_s4 = smov 128   ;;  %s1006_s5 = smov 8  }
 0x150   : > { %840 = dma.vmem_to_hbm [thread:$0]  (%p1065_p5), %s1231_s8, 4096, %s1229_s11, %s1241_s16, %s1005_s4, %s1005_s4, %s1006_s5  }
 0x151 PF: > { %p846_p1 = scmp.ge.s32.totalorder %s1001_s15, 2  ;;  %s702_s6 = sand.u32 1, %s989_s12  }
 0x152   : > { %s703_s7 = scalar_lea.sflag [#allocation3], %s702_s6 }
 0x153   : > { %p843_p2 = pnand %p846_p1, %p1069_p6 }
 0x155   : > { %984 = dma.done.wait (!%p843_p2), %s703_s7, 4096  }
 0x156   : > { %986 = vsyncadd (!%p843_p2), %s703_s7, 4294963200  ;;  %p13_p3 = scmp.ge.s32.totalorder %s1052_s18, 4   ;;  %s1288_s12 = smov %s993_s13 }
 0x157   : > { %s1289_s13 = smov %s997_s14  ;;  %s1290_s14 = smov %s1063_s21 }
 0x158   : > { %s1291_s15 = smov %s1052_s18  ;;  %15 = sbr.rel (!%p13_p3) target bundleno = 3 (0x3), region = 67 }
 0x15f   :  { %708 = vsyncpa [#allocation3], 1 }
 0x160   :  { %710 = vsyncpa [#allocation3 + $0x1], 1 }

</bundles_post_ra>
